<compile_context>
chip_gen: v7x
topology: tpu7x:2x2x1
jax: 0.10.0
libtpu: 0.0.40
codegen_flags: <defaults>
</compile_context>

<pallas_src>
import functools

import jax
import jax.numpy as jnp
from jax.experimental import pallas as pl
from jax.experimental.pallas import tpu as pltpu


def _softplus(z):
    # softplus(z) = log(1 + exp(z)); stable form.  exp/log go to the EUP slot.
    return jnp.maximum(z, 0.0) + jnp.log(1.0 + jnp.exp(-jnp.abs(z)))


def _neg_sampling_kernel(x_ref, o_ref, n_ref, partial_ref, *, n_samples, embed):
    # x_ref / o_ref : (TB, E)       batch on sublanes, embed on lanes (E = full dim)
    # n_ref         : (TB, S*E)     lane-dense; sample s occupies lanes [s*E, (s+1)*E)
    # partial_ref   : (1, 1, 128)   lane-dense per-tile partial sum (broadcast)
    x = x_ref[...].astype(jnp.float32)          # (TB, E)
    o = o_ref[...].astype(jnp.float32)          # (TB, E)
    n = n_ref[...].astype(jnp.float32)          # (TB, S*E)

    # Positive samples: per-row dot product over the E lanes.
    pos_dot = jnp.sum(x * o, axis=-1, keepdims=True)          # (TB, 1)
    loss_vec = _softplus(-pos_dot)                             # -log(sigmoid(dot))

    # Negative samples: static unroll over S; each iteration is a zero-cost
    # static lane slice of the already-loaded (TB, S*E) tile, an elementwise
    # multiply with x, and a 32-lane segment reduce.  Accumulate per-row.
    for s in range(n_samples):
        n_s = n[:, s * embed:(s + 1) * embed]                  # (TB, E)
        neg_dot = jnp.sum(n_s * x, axis=-1, keepdims=True)     # (TB, 1)
        loss_vec = loss_vec + _softplus(neg_dot)               # -log(sigmoid(-dot))

    acc = jnp.sum(loss_vec)                                    # single full reduce
    partial_ref[...] = jnp.full((1, 1, 128), acc, dtype=jnp.float32)


def _choose_batch_tile(batch, embed, n_samples, budget_bytes=12 * 1024 * 1024):
    """Largest batch tile (multiple of 128, dividing B) whose double-buffered
    f32 input footprint fits the default scoped-VMEM limit on every generation
    (16 MiB v5e, 32 MiB v6e/v7x).  Tiles are capped at 4096 rows so the 64 MiB
    per-core VMEM on v7x is never at risk, and we insist on >=2 grid tiles for
    batch > 128 so v7x's two TensorCores both stream from HBM."""
    bytes_per_row = 2 * 4 * embed * (n_samples + 2)   # 2x = double buffering, f32
    for tb in (4096, 2048, 1024, 512, 256, 128):
        if batch % tb != 0 or tb * bytes_per_row > budget_bytes:
            continue
        if batch > 128 and batch // tb < 2:
            continue                                   # keep both v7x cores busy
        return tb
    # TODO(synk): pad/mask the batch axis when B is large and not divisible by 128.
    return batch


def negative_sampling_loss(input_vectors, output_vectors, noise_vectors):
    """Pallas implementation of NegativeSamplingLoss.forward. Returns a scalar."""
    batch, embed = input_vectors.shape
    _, n_samples, _ = noise_vectors.shape

    tb = _choose_batch_tile(batch, embed, n_samples)
    num_tiles = batch // tb

    # Free, contiguous reshape: (B, S, E) -> (B, S*E).  No transpose, no extra
    # HBM pass; the trailing S*E axis is lane-dense.
    noise_flat = noise_vectors.reshape(batch, n_samples * embed)

    kernel = functools.partial(_neg_sampling_kernel, n_samples=n_samples, embed=embed)

    partials = pl.pallas_call(
        kernel,
        grid=(num_tiles,),
        in_specs=[
            pl.BlockSpec((tb, embed), lambda i: (i, 0)),
            pl.BlockSpec((tb, embed), lambda i: (i, 0)),
            pl.BlockSpec((tb, n_samples * embed), lambda i: (i, 0)),
        ],
        out_specs=pl.BlockSpec((1, 1, 128), lambda i: (i, 0, 0)),
        out_shape=jax.ShapeDtypeStruct((num_tiles, 1, 128), jnp.float32),
        compiler_params=pltpu.CompilerParams(
            dimension_semantics=("parallel",),
            vmem_limit_bytes=32 * 1024 * 1024,
        ),
        cost_estimate=pl.CostEstimate(
            flops=2 * batch * embed * (n_samples + 1),
            transcendentals=2 * batch * (n_samples + 1),
            bytes_accessed=4 * batch * embed * (n_samples + 2) + 4 * num_tiles * 128,
        ),
    )(input_vectors, output_vectors, noise_flat)

    # Tiny final reduction + mean over batch in XLA (keeps grid axis parallel).
    return jnp.sum(partials[:, 0, 0]) / batch


def _reference(input_vectors, output_vectors, noise_vectors):
    """Pure-JAX reference matching the PyTorch forward exactly."""
    b = input_vectors.shape[0]
    pos = jnp.sum(input_vectors * output_vectors, axis=-1)
    out_loss = -jnp.log(jax.nn.sigmoid(pos))
    neg = jnp.einsum("bse,be->bs", noise_vectors, input_vectors)
    noise_loss = -jnp.log(jax.nn.sigmoid(-neg))
    return (out_loss.sum() + noise_loss.sum()) / b


if __name__ == "__main__":
    key = jax.random.PRNGKey(0)
    k1, k2, k3 = jax.random.split(key, 3)

    batch, embed, n_samples = 8, 32, 4
    input_vectors = jax.random.normal(k1, (batch, embed), dtype=jnp.float32)
    output_vectors = jax.random.normal(k2, (batch, embed), dtype=jnp.float32)
    noise_vectors = jax.random.normal(k3, (batch, n_samples, embed), dtype=jnp.float32)

    loss = negative_sampling_loss(input_vectors, output_vectors, noise_vectors)
    loss = jax.block_until_ready(loss)

    ref = _reference(input_vectors, output_vectors, noise_vectors)
    assert jnp.allclose(loss, ref, rtol=1e-5, atol=1e-5), (loss, ref)
    print("KERNEL_OK")
</pallas_src>

<mosaic_0001>
module attributes {stable_mosaic.version = 11 : i64} {
  func.func @_neg_sampling_kernel(%arg0: i32, %arg1: memref<8x32xf32, #tpu.memory_space<vmem>>, %arg2: memref<8x32xf32, #tpu.memory_space<vmem>>, %arg3: memref<8x128xf32, #tpu.memory_space<vmem>>, %arg4: memref<1x1x128xf32, #tpu.memory_space<vmem>>) attributes {dimension_semantics = [#tpu.dimension_semantics<parallel>], iteration_bounds = array<i64: 1>, scalar_prefetch = 0 : i64, scratch_operands = 0 : i64, tpu.core_type = #tpu.core_type<tc>, window_params = [{transform_indices = @transform_0, window_bounds = array<i64: 8, 32>}, {transform_indices = @transform_1, window_bounds = array<i64: 8, 32>}, {transform_indices = @transform_2, window_bounds = array<i64: 8, 128>}, {transform_indices = @transform_3, window_bounds = array<i64: 1, 1, 128>}]} {
    %c0 = arith.constant 0 : index
    %c0_0 = arith.constant 0 : index
    %0 = vector.load %arg1[%c0, %c0_0] : memref<8x32xf32, #tpu.memory_space<vmem>>, vector<8x32xf32>
    %c0_1 = arith.constant 0 : index
    %c0_2 = arith.constant 0 : index
    %1 = vector.load %arg2[%c0_1, %c0_2] : memref<8x32xf32, #tpu.memory_space<vmem>>, vector<8x32xf32>
    %c0_3 = arith.constant 0 : index
    %c0_4 = arith.constant 0 : index
    %2 = vector.load %arg3[%c0_3, %c0_4] : memref<8x128xf32, #tpu.memory_space<vmem>>, vector<8x128xf32>
    %3 = arith.mulf %0, %1 : vector<8x32xf32>
    %cst = arith.constant dense<0.000000e+00> : vector<8xf32>
    %4 = vector.multi_reduction <add>, %3, %cst [1] : vector<8x32xf32> to vector<8xf32>
    %5 = vector.shape_cast %4 : vector<8xf32> to vector<8x1xf32>
    %cst_5 = arith.constant 0.000000e+00 : f32
    %6 = vector.broadcast %cst_5 : f32 to vector<8x1xf32>
    %7 = arith.subf %6, %5 : vector<8x1xf32>
    %cst_6 = arith.constant 0.000000e+00 : f32
    %8 = vector.broadcast %cst_6 : f32 to vector<8x1xf32>
    %9 = arith.maximumf %7, %8 : vector<8x1xf32>
    %10 = math.absf %7 : vector<8x1xf32>
    %cst_7 = arith.constant 0.000000e+00 : f32
    %11 = vector.broadcast %cst_7 : f32 to vector<8x1xf32>
    %12 = arith.subf %11, %10 : vector<8x1xf32>
    %13 = math.exp %12 : vector<8x1xf32>
    %cst_8 = arith.constant 1.000000e+00 : f32
    %14 = vector.broadcast %cst_8 : f32 to vector<8x1xf32>
    %15 = arith.addf %14, %13 : vector<8x1xf32>
    %16 = math.log %15 : vector<8x1xf32>
    %17 = arith.addf %9, %16 : vector<8x1xf32>
    %18 = vector.extract_strided_slice %2 {offsets = [0, 0], sizes = [8, 32], strides = [1, 1]} : vector<8x128xf32> to vector<8x32xf32>
    %19 = arith.mulf %18, %0 : vector<8x32xf32>
    %cst_9 = arith.constant dense<0.000000e+00> : vector<8xf32>
    %20 = vector.multi_reduction <add>, %19, %cst_9 [1] : vector<8x32xf32> to vector<8xf32>
    %21 = vector.shape_cast %20 : vector<8xf32> to vector<8x1xf32>
    %cst_10 = arith.constant 0.000000e+00 : f32
    %22 = vector.broadcast %cst_10 : f32 to vector<8x1xf32>
    %23 = arith.maximumf %21, %22 : vector<8x1xf32>
    %24 = math.absf %21 : vector<8x1xf32>
    %cst_11 = arith.constant 0.000000e+00 : f32
    %25 = vector.broadcast %cst_11 : f32 to vector<8x1xf32>
    %26 = arith.subf %25, %24 : vector<8x1xf32>
    %27 = math.exp %26 : vector<8x1xf32>
    %cst_12 = arith.constant 1.000000e+00 : f32
    %28 = vector.broadcast %cst_12 : f32 to vector<8x1xf32>
    %29 = arith.addf %28, %27 : vector<8x1xf32>
    %30 = math.log %29 : vector<8x1xf32>
    %31 = arith.addf %23, %30 : vector<8x1xf32>
    %32 = arith.addf %17, %31 : vector<8x1xf32>
    %33 = vector.extract_strided_slice %2 {offsets = [0, 32], sizes = [8, 32], strides = [1, 1]} : vector<8x128xf32> to vector<8x32xf32>
    %34 = arith.mulf %33, %0 : vector<8x32xf32>
    %cst_13 = arith.constant dense<0.000000e+00> : vector<8xf32>
    %35 = vector.multi_reduction <add>, %34, %cst_13 [1] : vector<8x32xf32> to vector<8xf32>
    %36 = vector.shape_cast %35 : vector<8xf32> to vector<8x1xf32>
    %cst_14 = arith.constant 0.000000e+00 : f32
    %37 = vector.broadcast %cst_14 : f32 to vector<8x1xf32>
    %38 = arith.maximumf %36, %37 : vector<8x1xf32>
    %39 = math.absf %36 : vector<8x1xf32>
    %cst_15 = arith.constant 0.000000e+00 : f32
    %40 = vector.broadcast %cst_15 : f32 to vector<8x1xf32>
    %41 = arith.subf %40, %39 : vector<8x1xf32>
    %42 = math.exp %41 : vector<8x1xf32>
    %cst_16 = arith.constant 1.000000e+00 : f32
    %43 = vector.broadcast %cst_16 : f32 to vector<8x1xf32>
    %44 = arith.addf %43, %42 : vector<8x1xf32>
    %45 = math.log %44 : vector<8x1xf32>
    %46 = arith.addf %38, %45 : vector<8x1xf32>
    %47 = arith.addf %32, %46 : vector<8x1xf32>
    %48 = vector.extract_strided_slice %2 {offsets = [0, 64], sizes = [8, 32], strides = [1, 1]} : vector<8x128xf32> to vector<8x32xf32>
    %49 = arith.mulf %48, %0 : vector<8x32xf32>
    %cst_17 = arith.constant dense<0.000000e+00> : vector<8xf32>
    %50 = vector.multi_reduction <add>, %49, %cst_17 [1] : vector<8x32xf32> to vector<8xf32>
    %51 = vector.shape_cast %50 : vector<8xf32> to vector<8x1xf32>
    %cst_18 = arith.constant 0.000000e+00 : f32
    %52 = vector.broadcast %cst_18 : f32 to vector<8x1xf32>
    %53 = arith.maximumf %51, %52 : vector<8x1xf32>
    %54 = math.absf %51 : vector<8x1xf32>
    %cst_19 = arith.constant 0.000000e+00 : f32
    %55 = vector.broadcast %cst_19 : f32 to vector<8x1xf32>
    %56 = arith.subf %55, %54 : vector<8x1xf32>
    %57 = math.exp %56 : vector<8x1xf32>
    %cst_20 = arith.constant 1.000000e+00 : f32
    %58 = vector.broadcast %cst_20 : f32 to vector<8x1xf32>
    %59 = arith.addf %58, %57 : vector<8x1xf32>
    %60 = math.log %59 : vector<8x1xf32>
    %61 = arith.addf %53, %60 : vector<8x1xf32>
    %62 = arith.addf %47, %61 : vector<8x1xf32>
    %63 = vector.extract_strided_slice %2 {offsets = [0, 96], sizes = [8, 32], strides = [1, 1]} : vector<8x128xf32> to vector<8x32xf32>
    %64 = arith.mulf %63, %0 : vector<8x32xf32>
    %cst_21 = arith.constant dense<0.000000e+00> : vector<8xf32>
    %65 = vector.multi_reduction <add>, %64, %cst_21 [1] : vector<8x32xf32> to vector<8xf32>
    %66 = vector.shape_cast %65 : vector<8xf32> to vector<8x1xf32>
    %cst_22 = arith.constant 0.000000e+00 : f32
    %67 = vector.broadcast %cst_22 : f32 to vector<8x1xf32>
    %68 = arith.maximumf %66, %67 : vector<8x1xf32>
    %69 = math.absf %66 : vector<8x1xf32>
    %cst_23 = arith.constant 0.000000e+00 : f32
    %70 = vector.broadcast %cst_23 : f32 to vector<8x1xf32>
    %71 = arith.subf %70, %69 : vector<8x1xf32>
    %72 = math.exp %71 : vector<8x1xf32>
    %cst_24 = arith.constant 1.000000e+00 : f32
    %73 = vector.broadcast %cst_24 : f32 to vector<8x1xf32>
    %74 = arith.addf %73, %72 : vector<8x1xf32>
    %75 = math.log %74 : vector<8x1xf32>
    %76 = arith.addf %68, %75 : vector<8x1xf32>
    %77 = arith.addf %62, %76 : vector<8x1xf32>
    %78 = vector.shape_cast %77 : vector<8x1xf32> to vector<1x8x1xf32>
    %cst_25 = arith.constant dense<0.000000e+00> : vector<1xf32>
    %79 = vector.multi_reduction <add>, %78, %cst_25 [1, 2] : vector<1x8x1xf32> to vector<1xf32>
    %80 = vector.shape_cast %79 : vector<1xf32> to vector<1x1x1xf32>
    %81 = vector.extract %80[0, 0, 0] : f32 from vector<1x1x1xf32>
    %82 = vector.broadcast %81 : f32 to vector<1x1x128xf32>
    %c0_26 = arith.constant 0 : index
    %c0_27 = arith.constant 0 : index
    %c0_28 = arith.constant 0 : index
    %83 = vector.load %arg4[%c0_26, %c0_27, %c0_28] : memref<1x1x128xf32, #tpu.memory_space<vmem>>, vector<1x1x128xf32>
    tpu.vector_store %arg4[%c0_26, %c0_27, %c0_28], %82 {strides = array<i32>} : memref<1x1x128xf32, #tpu.memory_space<vmem>>, vector<1x1x128xf32>,
    return
  }
  func.func @transform_0(%arg0: i32) -> (i32, i32) {
    %c0_i32 = arith.constant 0 : i32
    %c0_i32_0 = arith.constant 0 : i32
    return %arg0, %c0_i32 : i32, i32
  }
  func.func @transform_1(%arg0: i32) -> (i32, i32) {
    %c0_i32 = arith.constant 0 : i32
    %c0_i32_0 = arith.constant 0 : i32
    return %arg0, %c0_i32 : i32, i32
  }
  func.func @transform_2(%arg0: i32) -> (i32, i32) {
    %c0_i32 = arith.constant 0 : i32
    %c0_i32_0 = arith.constant 0 : i32
    return %arg0, %c0_i32 : i32, i32
  }
  func.func @transform_3(%arg0: i32) -> (i32, i32, i32) {
    %c0_i32 = arith.constant 0 : i32
    %c0_i32_0 = arith.constant 0 : i32
    %c0_i32_1 = arith.constant 0 : i32
    return %arg0, %c0_i32, %c0_i32_0 : i32, i32, i32
  }
}

</mosaic_0001>

<bundles_post_ra>
// kernel: tpu_custom_call.1
= control target key start
LH: loop header
LB: loop body
LE: loop exit
PB: predicated region body
PF: predicated region fallthrough
CT: control target
= control target key end

     0   :  { %8 = vsyncpa [#allocation3], 0  ;;  %s373_s0 = inlined_call_operand.hbm [shape: f32[8,32], index: 0, kind: input, shape index: {}]   ;;  %s374_s1 = inlined_call_operand.hbm [shape: f32[8,32], index: 1, kind: input, shape index: {}]   ;;  %s375_s2 = inlined_call_operand.hbm [shape: f32[8,128], index: 2, kind: input, shape index: {}]   ;;  %s376_s3 = inlined_call_operand.hbm [shape: f32[1,1,128], index: 3, kind: output, shape index: {}]  }
   0x1   :  { %9 = vsyncpa [#allocation6], 0 }
   0x2   :  { %10 = vsyncpa [#allocation4], 0  ;;  %s298_s12 = smov [#allocation5]   ;;  %s299_s14 = smov [#allocation2]  }
   0x3   :  { %s27_s13 = sshll.u32 %s298_s12, 4  ;;  %s17_s15 = sshll.u32 %s299_s14, 4  ;;  %s28_s13 = int_to_ptr.vmem [resolvable:$true] %s27_s13  ;;  %s18_s15 = int_to_ptr.vmem [resolvable:$true] %s17_s15 }
   0x4   :  { %s204_s18 = scalar_lea.hbm %s374_s1, 128 }
   0x5   :  { %p205_p0 = scmp.ne.s32.totalorder %s374_s1, %s204_s18  ;;  %p208_p1 = scmp.lt.u32.totalorder %s204_s18, %s374_s1 }
   0x7   :  { %p210_p2 = pnand %p208_p1, %p205_p0 }
   0x9   :  { %213 = shalt.err (!%p210_p2)
}
   0xa   :  { %s214_s23 = scalar_lea.vmem %s28_s13, 128  ;;  %p219_p4 = scmp.lt.s32.totalorder %s28_s13, %s28_s13 }
   0xb   :  { %p215_p3 = scmp.ne.s32.totalorder %s28_s13, %s214_s23  ;;  %p220_p5 = scmp.lt.s32.totalorder %s214_s23, %s214_s23 }
   0xd   :  { %p221_p6 = por %p220_p5, %p219_p4 }
   0xf   :  { %p222_p7 = pnand %p221_p6, %p215_p3 }
  0x11   :  { %225 = shalt.err (!%p222_p7)
}
  0x12   :  { %30 = dma.hbm_to_vmem [thread:$0]  %s374_s1, 128, %s28_s13, [#allocation6]  }
  0x13   :  { %s226_s28 = scalar_lea.hbm %s373_s0, 128 }
  0x14   :  { %p227_p8 = scmp.ne.s32.totalorder %s373_s0, %s226_s28  ;;  %p230_p9 = scmp.lt.u32.totalorder %s226_s28, %s373_s0 }
  0x16   :  { %p232_p10 = pnand %p230_p9, %p227_p8 }
  0x18   :  { %235 = shalt.err (!%p232_p10)
}
  0x19   :  { %s236_s6 = scalar_lea.vmem %s18_s15, 128  ;;  %p241_p12 = scmp.lt.s32.totalorder %s18_s15, %s18_s15 }
  0x1a   :  { %p237_p11 = scmp.ne.s32.totalorder %s18_s15, %s236_s6  ;;  %p242_p13 = scmp.lt.s32.totalorder %s236_s6, %s236_s6 }
  0x1c   :  { %p243_p0 = por %p242_p13, %p241_p12 }
  0x1e   :  { %p244_p1 = pnand %p243_p0, %p237_p11 }
  0x20   :  { %247 = shalt.err (!%p244_p1)
}
  0x21   :  { %20 = dma.hbm_to_vmem [thread:$0]  %s373_s0, 128, %s18_s15, [#allocation3]  }
  0x22   :  { %s300_s8 = smov [#allocation7]   ;;  %s248_s12 = scalar_lea.hbm %s375_s2, 128 }
  0x23   :  { %s37_s9 = sshll.u32 %s300_s8, 4  ;;  %p249_p2 = scmp.ne.s32.totalorder %s375_s2, %s248_s12  ;;  %s38_s9 = int_to_ptr.vmem [resolvable:$true] %s37_s9 }
  0x24   :  { %p252_p3 = scmp.lt.u32.totalorder %s248_s12, %s375_s2 }
  0x26   :  { %p254_p4 = pnand %p252_p3, %p249_p2 }
  0x28   :  { %257 = shalt.err (!%p254_p4)
}
  0x29   :  { %s258_s18 = scalar_lea.vmem %s38_s9, 128  ;;  %p263_p6 = scmp.lt.s32.totalorder %s38_s9, %s38_s9 }
  0x2a   :  { %p259_p5 = scmp.ne.s32.totalorder %s38_s9, %s258_s18  ;;  %p264_p7 = scmp.lt.s32.totalorder %s258_s18, %s258_s18 }
  0x2c   :  { %p265_p8 = por %p264_p7, %p263_p6 }
  0x2e   :  { %p266_p9 = pnand %p265_p8, %p259_p5 }
  0x30   :  { %269 = shalt.err (!%p266_p9)
}
  0x31   :  { %40 = dma.hbm_to_vmem [thread:$0]  %s375_s2, 128, %s38_s9, [#allocation6]  }
  0x32   :  { %292 = dma.done.wait [#allocation3], 128  }
  0x33   :  { %293 = vsyncadd [#allocation3], 4294967168 }
  0x34   :  { %294 = dma.done.wait [#allocation6], 256  }
  0x35   :  { %295 = vsyncadd [#allocation6], 4294967040  ;;  %v50_v0 = vld [vmem:[#allocation2] sm:$0xff]  ;;  %s301_s19 = smov 32   ;;  %s302_s20 = smov 96   ;;  %v52_v1 = vld [vmem:[#allocation7] sm:$0xff] }
  0x36   :  { %83 = vrot.lane.b32.xlu0 %v50_v0, %s301_s19  ;;  %125 = vrot.lane.b32.xlu1 %v50_v0, %s302_s20  ;;  %s303_s21 = smov 64   ;;  %v51_v8 = vld [vmem:[#allocation5] sm:$0xff]  ;;  %vm54_vm0 = vcmask 261120   ;;  %v68_v11 = vmul.f32 %v52_v1, %v50_v0  ;;  %vm146_vm1 = vcmask 7168   ;;  %s304_s2 = smov [#allocation8]  }
  0x37   :  { %v53_v9 = vmul.f32 %v51_v8, %v50_v0  ;;  %s165_s22 = sshll.u32 %s304_s2, 4  ;;  %s166_s22 = int_to_ptr.vmem [resolvable:$true] %s165_s22 }
  0x38   :  { %v69_v12 = vsel %vm54_vm0, %v68_v11, 0.0  ;;  %s270_s24 = scalar_lea.vmem %s166_s22, 16  ;;  %s274_s25 = scalar_lea.vmem %s166_s22, 32 }
  0x39   :  { %v55_v10 = vsel %vm54_vm0, %v53_v9, 0.0  ;;  %p271_p10 = scmp.ne.s32.totalorder %s166_s22, %s270_s24  ;;  %p275_p11 = scmp.lt.s32.totalorder %s166_s22, %s166_s22 }
  0x3a   :  { %104 = vrot.lane.b32.xlu0 %v50_v0, %s303_s21  ;;  %p276_p12 = scmp.lt.s32.totalorder %s274_s25, %s270_s24 }
  0x3c   :  { %p277_p13 = por %p276_p12, %p275_p11 }
  0x3e   :  { %p278_p0 = pnand %p277_p13, %p271_p10 }
  0xa8   :  { %v84_v2 = vpop.permute.xlu0 %83  ;;  %v126_v3 = vpop.permute.xlu1 %125 }
  0xa9   :  { %v86_v4 = vmul.f32 %v84_v2, %v52_v1  ;;  %v128_v5 = vmul.f32 %v126_v3, %v52_v1 }
  0xab   :  { %88 = vrot.lane.b32.xlu1 %v86_v4, %s302_s20 }
  0xac   :  { %v105_v6 = vpop.permute.xlu0 %104 }
  0xad   :  { %v107_v7 = vmul.f32 %v105_v6, %v52_v1 }
  0xaf   :  { %130 = vrot.lane.b32.xlu1 %v128_v5, %s301_s19  ;;  %109 = vrot.lane.b32.xlu0 %v107_v7, %s303_s21 }
  0xce   :  { %56 = vadd.xlane.f32.xlu0 %v55_v10 }
  0xd3   :  { %70 = vadd.xlane.f32.xlu1 %v69_v12 }
 0x11d   :  { %v89_v13 = vpop.permute.xlu1 %88 }
 0x11e   :  { %v91_v14 = vsel %vm54_vm0, %v89_v13, 0.0 }
 0x11f   :  { %92 = vadd.xlane.f32.xlu0 %v91_v14 }
 0x121   :  { %v131_v15 = vpop.permute.xlu1 %130  ;;  %v110_v16 = vpop.permute.xlu0 %109 }
 0x122   :  { %v133_v17 = vsel %vm54_vm0, %v131_v15, 0.0  ;;  %v112_v18 = vsel %vm54_vm0, %v110_v16, 0.0 }
 0x123   :  { %134 = vadd.xlane.f32.xlu1 %v133_v17  ;;  %113 = vadd.xlane.f32.xlu0 %v112_v18 }
 0x15b   :  { %v57_v19 = vpop.xlane.xlu0 %56 }
 0x15c   :  { %v58_v20 = vsub.f32 0.0, %v57_v19 }
 0x15e   :  { %v60_v22 = vand.u32 2147483647, %v58_v20  ;;  %v59_v52 = vmax.f32 %v58_v20, 0.0 }
 0x160   :  { %v71_v21 = vpop.xlane.xlu1 %70  ;;  %v61_v24 = vsub.f32 0.0, %v60_v22 }
 0x161   :  { %v73_v23 = vand.u32 2147483647, %v71_v21  ;;  %v72_v54 = vmax.f32 %v71_v21, 0.0 }
 0x162   :  { %v62_v26 = vmul.f32 1.442695, %v61_v24 }
 0x163   :  { %v74_v25 = vsub.f32 0.0, %v73_v23 }
 0x164   :  { %184 = vpow2.f32 %v62_v26 }
 0x165   :  { %v75_v27 = vmul.f32 1.442695, %v74_v25 }
 0x167   :  { %186 = vpow2.f32 %v75_v27 }
 0x16e   :  { %v185_v36 = vpop.eup %184 }
 0x16f   :  { %v64_v41 = vadd.f32 1.0, %v185_v36 }
 0x171   :  { %v187_v38 = vpop.eup %186 }
 0x172   :  { %v77_v43 = vadd.f32 1.0, %v187_v38 }
 0x1ac   :  { %v93_v28 = vpop.xlane.xlu0 %92 }
 0x1ad   :  { %v95_v29 = vand.u32 2147483647, %v93_v28  ;;  %v94_v60 = vmax.f32 %v93_v28, 0.0 }
 0x1af   :  { %v96_v30 = vsub.f32 0.0, %v95_v29 }
 0x1b0   :  { %v135_v31 = vpop.xlane.xlu1 %134  ;;  %v114_v32 = vpop.xlane.xlu0 %113 }
 0x1b1   :  { %v97_v33 = vmul.f32 1.442695, %v96_v30  ;;  %v137_v34 = vand.u32 2147483647, %v135_v31  ;;  %v116_v35 = vand.u32 2147483647, %v114_v32 }
 0x1b2   :  { %v115_v2 = vmax.f32 %v114_v32, 0.0  ;;  %v136_v5 = vmax.f32 %v135_v31, 0.0 }
 0x1b3   :  { %188 = vpow2.f32 %v97_v33  ;;  %v138_v37 = vsub.f32 0.0, %v137_v34  ;;  %v117_v39 = vsub.f32 0.0, %v116_v35 }
 0x1b5   :  { %v139_v40 = vmul.f32 1.442695, %v138_v37  ;;  %v118_v42 = vmul.f32 1.442695, %v117_v39 }
 0x1b7   :  { %190 = vpow2.f32 %v139_v40 }
 0x1b8   :  { %192 = vpow2.f32 %v118_v42 }
 0x1b9   :  { %194 = vlog2.f32 %v64_v41 }
 0x1ba   :  { %196 = vlog2.f32 %v77_v43 }
 0x1bd   :  { %v189_v44 = vpop.eup %188 }
 0x1be   :  { %v99_v45 = vadd.f32 1.0, %v189_v44 }
 0x1c0   :  { %198 = vlog2.f32 %v99_v45 }
 0x1c1   :  { %v191_v46 = vpop.eup %190 }
 0x1c2   :  { %v193_v47 = vpop.eup %192  ;;  %v141_v48 = vadd.f32 1.0, %v191_v46 }
 0x1c3   :  { %v120_v49 = vadd.f32 1.0, %v193_v47  ;;  %v195_v50 = vpop.eup %194 }
 0x1c4   :  { %200 = vlog2.f32 %v141_v48  ;;  %v197_v51 = vpop.eup %196  ;;  %v66_v53 = vmul.f32 0.6931472, %v195_v50 }
 0x1c5   :  { %202 = vlog2.f32 %v120_v49  ;;  %v79_v55 = vmul.f32 0.6931472, %v197_v51 }
 0x1c6   :  { %v67_v58 = vadd.f32 %v66_v53, %v59_v52 }
 0x1c7   :  { %v80_v59 = vadd.f32 %v79_v55, %v72_v54 }
 0x1c9   :  { %v81_v0 = vadd.f32 %v80_v59, %v67_v58 }
 0x1ca   :  { %v199_v56 = vpop.eup %198 }
 0x1cb   :  { %v101_v57 = vmul.f32 0.6931472, %v199_v56 }
 0x1cd   :  { %v102_v62 = vadd.f32 %v101_v57, %v94_v60 }
 0x1ce   :  { %v201_v61 = vpop.eup %200 }
 0x1cf   :  { %v203_v63 = vpop.eup %202  ;;  %v143_v1 = vmul.f32 0.6931472, %v201_v61  ;;  %v103_v4 = vadd.f32 %v102_v62, %v81_v0 }
 0x1d0   :  { %v122_v3 = vmul.f32 0.6931472, %v203_v63 }
 0x1d1   :  { %v144_v7 = vadd.f32 %v143_v1, %v136_v5 }
 0x1d2   :  { %v123_v6 = vadd.f32 %v122_v3, %v115_v2 }
 0x1d4   :  { %v124_v8 = vadd.f32 %v123_v6, %v103_v4 }
 0x1d6   :  { %v145_v9 = vadd.f32 %v144_v7, %v124_v8 }
 0x1d8   :  { %v147_v10 = vsel %vm146_vm1, %v145_v9, 0.0 }
 0x1d9   :  { %148 = vadd.xlane.f32.xlu0 %v147_v10 }
 0x266   :  { %v149_v11 = vpop.xlane.xlu0 %148 }
 0x267   :  { %v150_v12 = vrot.slane %v149_v11, 4 }
 0x269   :  { %v151_v13 = vadd.f32 %v150_v12, %v149_v11 }
 0x26b   :  { %v152_v14 = vrot.slane %v151_v13, 2 }
 0x26d   :  { %v153_v15 = vadd.f32 %v152_v14, %v151_v13 }
 0x26f   :  { %v154_v16 = vrot.slane %v153_v15, 1 }
 0x271   :  { %v155_v17 = vadd.f32 %v154_v16, %v153_v15 }
 0x273   :  { %175 = vpush %v155_v17 }
 0x2a4   :  { %s176_s23 = spop %175 }
 0x2a5   :  { %v157_v18 = vstv %s176_s23 }
 0x2a6   :  { %158 = vst [vmem:[#allocation8] sm:$0x1] %v157_v18 }
 0x2a7   :  { %281 = shalt.err (!%p278_p0)
}
 0x2a8   :  { %s282_s28 = scalar_lea.hbm %s376_s3, 16 }
 0x2a9   :  { %p283_p1 = scmp.ne.s32.totalorder %s376_s3, %s282_s28  ;;  %p286_p2 = scmp.lt.u32.totalorder %s282_s28, %s376_s3 }
 0x2ab   :  { %p288_p3 = pnand %p286_p2, %p283_p1 }
 0x2ad   :  { %291 = shalt.err (!%p288_p3)
}
 0x2ae   :  { %168 = dma.vmem_to_hbm [thread:$0]  %s166_s22, 16, %s376_s3, [#allocation4]  }
 0x2af   :  { %296 = dma.done.wait [#allocation4], 16  }
 0x2b0   :  { %297 = vsyncadd [#allocation4], 4294967280 }
 0x2b1   :  { %172 = vsyncpa [#allocation3], 1 }
 0x2b2   :  { %173 = vsyncpa [#allocation6], 1 }
 0x2b3   :  { %174 = vsyncpa [#allocation4], 1 }

</bundles_post_ra>
